<compile_context>
chip_gen: v6e
topology: v6e:2x2x1
jax: 0.10.0
libtpu: 0.0.40
codegen_flags: <defaults>
</compile_context>

<pallas_src>
import functools

import jax
import jax.numpy as jnp
from jax import lax
from jax.experimental import pallas as pl
from jax.experimental.pallas import tpu as pltpu

_EPS = 1e-5
_LANE = 128


def _round_up(x, m):
    return (x + m - 1) // m * m


def _vmem_limit_bytes():
    """Generation-aware scoped-VMEM budget (~80% of physical VMEM per core)."""
    cap = 64 << 20                       # conservative default (v7x: 64 MiB/TC)
    try:
        info = pltpu.get_tpu_info()      # v5e/v6e report 128 MiB
        cap = int(getattr(info, "vmem_capacity_bytes", cap) or cap)
    except Exception:
        pass
    return int(cap * 0.8)


# ---------------------------------------------------------------------------
# In-kernel helpers
# ---------------------------------------------------------------------------
def _bn_folded_from_sums(s, q, gamma, beta, n_rows):
    """Training-mode BatchNorm1d folded to scale/shift from (sum, sumsq).

    var = E[h^2] - mean^2 (single pass over the data), clamped at 0 for
    numerical safety.
    TODO(synk): switch to a Welford/Chan combine if activations become strongly
    off-centered (cancellation risk of E[h^2]-mean^2) at very large batches.
    """
    inv_n = 1.0 / n_rows
    mean = s * inv_n
    var = jnp.maximum(q * inv_n - mean * mean, 0.0)
    scale = gamma * lax.rsqrt(var + _EPS)   # rsqrt -> EUP slot (cheap)
    shift = beta - mean * scale
    return scale, shift


def _bn_folded(h, gamma, beta, n_rows):
    s = jnp.sum(h, axis=0, keepdims=True)
    q = jnp.sum(h * h, axis=0, keepdims=True)
    return _bn_folded_from_sums(s, q, gamma, beta, n_rows)


def _pad_lanes(a, p):
    """Zero-pad the lane (last) dim of a 2-D VMEM value up to width p."""
    rows, w = a.shape
    if w == p:
        return a
    return jnp.concatenate([a, jnp.zeros((rows, p - w), a.dtype)], axis=1)


def _row_mask(i, tile_rows, n_rows):
    rows = i * tile_rows + lax.broadcasted_iota(jnp.int32, (tile_rows, 1), 0)
    return rows < n_rows


# ---------------------------------------------------------------------------
# Fused single-call kernels (small / medium batch: everything lives in VMEM)
# ---------------------------------------------------------------------------
def _fused_proj_kernel(x_ref, w1_ref, wl_ref, w2_ref, g1_ref, be1_ref,
                       g2_ref, be2_ref, bl_ref, o_ref, *, n_rows):
    x = x_ref[...].astype(w1_ref.dtype)
    h1 = jnp.dot(x, w1_ref[...], preferred_element_type=jnp.float32)
    xr = jnp.dot(x, wl_ref[...], preferred_element_type=jnp.float32)
    sc1, sh1 = _bn_folded(h1, g1_ref[...], be1_ref[...], n_rows)
    a = jnp.maximum(h1 * sc1 + sh1, 0.0)
    h2 = jnp.dot(a.astype(w2_ref.dtype), w2_ref[...],
                 preferred_element_type=jnp.float32)
    sc2, sh2 = _bn_folded(h2, g2_ref[...], be2_ref[...], n_rows)
    # Projection bias folded into BN2's shift: a (1,p) add instead of (N,p).
    o_ref[...] = jnp.maximum(xr + h2 * sc2 + (sh2 + bl_ref[...]), 0.0)


def _fused_id_kernel(x_ref, w1_ref, w2_ref, g1_ref, be1_ref,
                     g2_ref, be2_ref, o_ref, *, n_rows, p):
    x = x_ref[...]
    h1 = jnp.dot(x.astype(w1_ref.dtype), w1_ref[...],
                 preferred_element_type=jnp.float32)
    sc1, sh1 = _bn_folded(h1, g1_ref[...], be1_ref[...], n_rows)
    a = jnp.maximum(h1 * sc1 + sh1, 0.0)
    h2 = jnp.dot(a.astype(w2_ref.dtype), w2_ref[...],
                 preferred_element_type=jnp.float32)
    sc2, sh2 = _bn_folded(h2, g2_ref[...], be2_ref[...], n_rows)
    o_ref[...] = jnp.maximum(_pad_lanes(x, p) + (h2 * sc2 + sh2), 0.0)


# ---------------------------------------------------------------------------
# Batch-tiled 3-phase kernels (large batch; BlockSpec-pipelined grid)
# ---------------------------------------------------------------------------
def _phase_a_proj_kernel(x_ref, w1_ref, wl_ref, h1_ref, xr_ref, s1_ref, q1_ref,
                         *, n_rows, tile_rows):
    i = pl.program_id(0)

    @pl.when(i == 0)
    def _init():
        s1_ref[...] = jnp.zeros_like(s1_ref)
        q1_ref[...] = jnp.zeros_like(q1_ref)

    x = x_ref[...].astype(w1_ref.dtype)
    h1 = jnp.dot(x, w1_ref[...], preferred_element_type=jnp.float32)
    xr_ref[...] = jnp.dot(x, wl_ref[...], preferred_element_type=jnp.float32)
    h1_ref[...] = h1
    hm = jnp.where(_row_mask(i, tile_rows, n_rows), h1, 0.0)
    s1_ref[...] += jnp.sum(hm, axis=0, keepdims=True)
    q1_ref[...] += jnp.sum(hm * hm, axis=0, keepdims=True)


def _phase_a_id_kernel(x_ref, w1_ref, h1_ref, s1_ref, q1_ref,
                       *, n_rows, tile_rows):
    i = pl.program_id(0)

    @pl.when(i == 0)
    def _init():
        s1_ref[...] = jnp.zeros_like(s1_ref)
        q1_ref[...] = jnp.zeros_like(q1_ref)

    x = x_ref[...].astype(w1_ref.dtype)
    h1 = jnp.dot(x, w1_ref[...], preferred_element_type=jnp.float32)
    h1_ref[...] = h1
    hm = jnp.where(_row_mask(i, tile_rows, n_rows), h1, 0.0)
    s1_ref[...] += jnp.sum(hm, axis=0, keepdims=True)
    q1_ref[...] += jnp.sum(hm * hm, axis=0, keepdims=True)


def _phase_b_kernel(h1_ref, w2_ref, g1_ref, be1_ref, s1_ref, q1_ref,
                    h2_ref, s2_ref, q2_ref, *, n_rows, tile_rows):
    i = pl.program_id(0)

    @pl.when(i == 0)
    def _init():
        s2_ref[...] = jnp.zeros_like(s2_ref)
        q2_ref[...] = jnp.zeros_like(q2_ref)

    sc1, sh1 = _bn_folded_from_sums(s1_ref[...], q1_ref[...],
                                    g1_ref[...], be1_ref[...], n_rows)
    a = jnp.maximum(h1_ref[...] * sc1 + sh1, 0.0)
    h2 = jnp.dot(a.astype(w2_ref.dtype), w2_ref[...],
                 preferred_element_type=jnp.float32)
    h2_ref[...] = h2
    hm = jnp.where(_row_mask(i, tile_rows, n_rows), h2, 0.0)
    s2_ref[...] += jnp.sum(hm, axis=0, keepdims=True)
    q2_ref[...] += jnp.sum(hm * hm, axis=0, keepdims=True)


def _phase_c_proj_kernel(h2_ref, xr_ref, g2_ref, be2_ref, bl_ref, s2_ref, q2_ref,
                         o_ref, *, n_rows):
    sc2, sh2 = _bn_folded_from_sums(s2_ref[...], q2_ref[...],
                                    g2_ref[...], be2_ref[...], n_rows)
    o_ref[...] = jnp.maximum(
        xr_ref[...] + h2_ref[...] * sc2 + (sh2 + bl_ref[...]), 0.0)


def _phase_c_id_kernel(h2_ref, x_ref, g2_ref, be2_ref, s2_ref, q2_ref,
                       o_ref, *, n_rows, p):
    sc2, sh2 = _bn_folded_from_sums(s2_ref[...], q2_ref[...],
                                    g2_ref[...], be2_ref[...], n_rows)
    o_ref[...] = jnp.maximum(
        _pad_lanes(x_ref[...], p) + (h2_ref[...] * sc2 + sh2), 0.0)


# ---------------------------------------------------------------------------
# One-time parameter preparation (transpose / lane-pad / cast) — not per call.
# ---------------------------------------------------------------------------
def prepare_params(params, input_size, output_size, mxu_dtype=jnp.bfloat16):
    """Transpose weights, zero-pad the feature dim to a multiple of 128 and cast
    matmul weights to the MXU dtype (bf16 by default).  BN params stay f32.
    b1/b2 are intentionally dropped: training-mode BN cancels them exactly."""
    has_proj = input_size != output_size
    p = _round_up(output_size, _LANE)

    def mat(w_t):                                   # (K, out) -> (K, p), mxu dtype
        return jnp.pad(w_t, ((0, 0), (0, p - w_t.shape[1]))).astype(mxu_dtype)

    def vec(v):                                     # (out,) -> (1, p), f32
        return jnp.pad(v.reshape(1, -1),
                       ((0, 0), (0, p - v.shape[0]))).astype(jnp.float32)

    prepared = {
        "w1": mat(params["w1"].T),                                   # (in, p)
        "w2": jnp.pad(params["w2"].T,
                      ((0, p - output_size), (0, p - output_size))
                      ).astype(mxu_dtype),                           # (p, p)
        "g1": vec(params["g1"]), "be1": vec(params["be1"]),
        "g2": vec(params["g2"]), "be2": vec(params["be2"]),
    }
    if has_proj:
        prepared["wl"] = mat(params["wl"].T)                         # (in, p)
        prepared["bl"] = vec(params["bl"])                           # (1, p)
    return prepared


# ---------------------------------------------------------------------------
# pallas_call wrappers
# ---------------------------------------------------------------------------
def _full_spec(a):
    nd = a.ndim
    return pl.BlockSpec(a.shape, lambda *_, _nd=nd: (0,) * _nd)


def _call_fused(x, pp, n, k, p, has_proj, vmem_limit):
    if has_proj:
        kernel = functools.partial(_fused_proj_kernel, n_rows=n)
        args = (x, pp["w1"], pp["wl"], pp["w2"], pp["g1"], pp["be1"],
                pp["g2"], pp["be2"], pp["bl"])
        flops = 2 * n * k * p * 2 + 2 * n * p * p
    else:
        kernel = functools.partial(_fused_id_kernel, n_rows=n, p=p)
        args = (x, pp["w1"], pp["w2"], pp["g1"], pp["be1"], pp["g2"], pp["be2"])
        flops = 2 * n * k * p + 2 * n * p * p

    bytes_acc = sum(int(a.size) * a.dtype.itemsize for a in args) + n * p * 4
    return pl.pallas_call(
        kernel,
        out_shape=jax.ShapeDtypeStruct((n, p), jnp.float32),
        in_specs=[_full_spec(a) for a in args],
        out_specs=pl.BlockSpec((n, p), lambda *_: (0, 0)),
        compiler_params=pltpu.CompilerParams(vmem_limit_bytes=vmem_limit),
        cost_estimate=pl.CostEstimate(flops=flops, transcendentals=2 * p,
                                      bytes_accessed=bytes_acc),
    )(*args)


def _choose_tile_rows(n, input_size, p, vmem_limit, has_proj):
    """Largest multiple-of-256 row tile that keeps double-buffered tiles plus the
    resident weights comfortably inside the generation's VMEM budget."""
    n8 = _round_up(n, 8)
    per_row = 2 * 4 * (input_size + 3 * p)                  # dbl-buffered f32 tiles
    w_bytes = 2 * 2 * ((2 if has_proj else 1) * input_size * p + p * p)
    budget = int(vmem_limit * 0.6) - w_bytes - (1 << 20)
    tile = max(256, (budget // max(per_row, 1)) // 256 * 256)
    return int(min(tile, n8))


def _call_tiled(x, pp, n, k, p, has_proj, vmem_limit, tile_rows):
    if tile_rows is None:
        tile_rows = _choose_tile_rows(n, k, p, vmem_limit, has_proj)
    tile_rows = min(_round_up(int(tile_rows), 8), _round_up(n, 8))
    nt = pl.cdiv(n, tile_rows)
    n_pad = nt * tile_rows

    # Row-pad x once so every block exactly tiles its array (no OOB blocks);
    # BN statistics are still computed over exactly n rows via in-kernel masks.
    x_t = x if n_pad == n else jnp.pad(x, ((0, n_pad - n), (0, 0)))

    f32 = jnp.float32
    row_spec = lambda w: pl.BlockSpec((tile_rows, w), lambda i: (i, 0))
    res_spec = lambda a: pl.BlockSpec(a.shape, lambda i, _nd=a.ndim: (0,) * _nd)
    stat_spec = pl.BlockSpec((1, p), lambda i: (0, 0))
    stat_shape = jax.ShapeDtypeStruct((1, p), f32)
    cp_acc = pltpu.CompilerParams(dimension_semantics=("arbitrary",),
                                  vmem_limit_bytes=vmem_limit)
    cp_par = pltpu.CompilerParams(dimension_semantics=("parallel",),
                                  vmem_limit_bytes=vmem_limit)

    # ---- Phase A: Linear1 (+ projection), accumulate BN1 sum / sumsq ---------
    if has_proj:
        h1, xr, s1, q1 = pl.pallas_call(
            functools.partial(_phase_a_proj_kernel, n_rows=n, tile_rows=tile_rows),
            grid=(nt,),
            out_shape=(jax.ShapeDtypeStruct((n_pad, p), f32),
                       jax.ShapeDtypeStruct((n_pad, p), f32),
                       stat_shape, stat_shape),
            in_specs=[row_spec(k), res_spec(pp["w1"]), res_spec(pp["wl"])],
            out_specs=(row_spec(p), row_spec(p), stat_spec, stat_spec),
            compiler_params=cp_acc,
        )(x_t, pp["w1"], pp["wl"])
    else:
        h1, s1, q1 = pl.pallas_call(
            functools.partial(_phase_a_id_kernel, n_rows=n, tile_rows=tile_rows),
            grid=(nt,),
            out_shape=(jax.ShapeDtypeStruct((n_pad, p), f32),
                       stat_shape, stat_shape),
            in_specs=[row_spec(k), res_spec(pp["w1"])],
            out_specs=(row_spec(p), stat_spec, stat_spec),
            compiler_params=cp_acc,
        )(x_t, pp["w1"])
        xr = None

    # ---- Phase B: BN1 + ReLU + Linear2, accumulate BN2 sum / sumsq -----------
    h2, s2, q2 = pl.pallas_call(
        functools.partial(_phase_b_kernel, n_rows=n, tile_rows=tile_rows),
        grid=(nt,),
        out_shape=(jax.ShapeDtypeStruct((n_pad, p), f32), stat_shape, stat_shape),
        in_specs=[row_spec(p), res_spec(pp["w2"]), res_spec(pp["g1"]),
                  res_spec(pp["be1"]), stat_spec, stat_spec],
        out_specs=(row_spec(p), stat_spec, stat_spec),
        compiler_params=cp_acc,
    )(h1, pp["w2"], pp["g1"], pp["be1"], s1, q1)

    # ---- Phase C: BN2 + residual + ReLU ("parallel" -> v7x megacore) ---------
    if has_proj:
        out = pl.pallas_call(
            functools.partial(_phase_c_proj_kernel, n_rows=n),
            grid=(nt,),
            out_shape=jax.ShapeDtypeStruct((n_pad, p), f32),
            in_specs=[row_spec(p), row_spec(p), res_spec(pp["g2"]),
                      res_spec(pp["be2"]), res_spec(pp["bl"]),
                      stat_spec, stat_spec],
            out_specs=row_spec(p),
            compiler_params=cp_par,
        )(h2, xr, pp["g2"], pp["be2"], pp["bl"], s2, q2)
    else:
        out = pl.pallas_call(
            functools.partial(_phase_c_id_kernel, n_rows=n, p=p),
            grid=(nt,),
            out_shape=jax.ShapeDtypeStruct((n_pad, p), f32),
            in_specs=[row_spec(p), row_spec(k), res_spec(pp["g2"]),
                      res_spec(pp["be2"]), stat_spec, stat_spec],
            out_specs=row_spec(p),
            compiler_params=cp_par,
        )(h2, x_t, pp["g2"], pp["be2"], s2, q2)

    return out


def residual_block_mlp(x, prepared, input_size, output_size, *,
                       keep_padded=False, tile_rows=None):
    """Forward pass of ResidualBlockMLP (training-mode BatchNorm).

    x: (N, input_size) float32; prepared = prepare_params(...).
    keep_padded=True returns the lane-padded (N, round_up(out,128)) result so
    chained blocks can skip the un-pad slice; tile_rows forces the batch-tiled
    path with that tile size (None = automatic)."""
    n, k = x.shape
    assert k == input_size, "x width must equal input_size"
    has_proj = input_size != output_size
    p = _round_up(output_size, _LANE)
    vmem_limit = _vmem_limit_bytes()

    w_bytes = sum(int(v.size) * v.dtype.itemsize for v in prepared.values())
    n8 = _round_up(n, 8)
    # Generous upper bound on live VMEM for the fused kernel (f32 x, h1, a, h2,
    # xr, out + bf16 casts) used to pick the execution path.
    fused_bytes = 4 * n8 * (k + 5 * p) + 2 * n8 * (k + p) + w_bytes

    if tile_rows is None and fused_bytes < int(vmem_limit * 0.5):
        out = _call_fused(x, prepared, n, k, p, has_proj, vmem_limit)
    else:
        out = _call_tiled(x, prepared, n, k, p, has_proj, vmem_limit, tile_rows)

    if keep_padded:
        return out if out.shape[0] == n else out[:n]
    if out.shape[0] != n or p != output_size:
        out = out[:n, :output_size]
    return out


# ---------------------------------------------------------------------------
# Plain-JAX reference (faithful to PyTorch, including the dead bias adds)
# ---------------------------------------------------------------------------
def _bn_reference(h, gamma, beta, eps=_EPS):
    mean = jnp.mean(h, axis=0, keepdims=True)
    var = jnp.mean((h - mean) ** 2, axis=0, keepdims=True)
    return (h - mean) * lax.rsqrt(var + eps) * gamma + beta


def _reference(x, params, input_size, output_size):
    h = x @ params["w1"].T + params["b1"]
    h = _bn_reference(h, params["g1"], params["be1"])
    h = jnp.maximum(h, 0.0)
    h = h @ params["w2"].T + params["b2"]
    h = _bn_reference(h, params["g2"], params["be2"])
    xr = x @ params["wl"].T + params["bl"] if input_size != output_size else x
    return jnp.maximum(xr + h, 0.0)


def init_params(key, input_size, output_size):
    """Deterministic synthetic parameters (PyTorch shapes & init style)."""
    ks = jax.random.split(key, 6)

    def linear(kw, kb, fan_in, fan_out):
        bound = 1.0 / jnp.sqrt(fan_in)
        w = jax.random.uniform(kw, (fan_out, fan_in), jnp.float32, -bound, bound)
        b = jax.random.uniform(kb, (fan_out,), jnp.float32, -bound, bound)
        return w, b

    w1, b1 = linear(ks[0], ks[1], input_size, output_size)
    w2, b2 = linear(ks[2], ks[3], output_size, output_size)
    wl, bl = linear(ks[4], ks[5], input_size, output_size)
    return {
        "w1": w1, "b1": b1,
        "g1": jnp.ones((output_size,), jnp.float32),
        "be1": jnp.zeros((output_size,), jnp.float32),
        "w2": w2, "b2": b2,
        "g2": jnp.ones((output_size,), jnp.float32),
        "be2": jnp.zeros((output_size,), jnp.float32),
        "wl": wl, "bl": bl,
    }


if __name__ == "__main__":
    key = jax.random.PRNGKey(0)
    kx, kp = jax.random.split(key)

    # Case 1: projection path, small batch -> fused kernel, f32 MXU (exact check).
    in_s, out_s, batch = 32, 64, 8
    x = jax.random.normal(kx, (batch, in_s), jnp.float32)
    params = init_params(kp, in_s, out_s)
    prep = prepare_params(params, in_s, out_s, mxu_dtype=jnp.float32)
    out = jax.block_until_ready(residual_block_mlp(x, prep, in_s, out_s))
    ref = _reference(x, params, in_s, out_s)
    assert out.shape == (batch, out_s)
    assert jnp.allclose(out, ref, atol=1e-4, rtol=1e-4), "case1 fused/proj mismatch"

    # Case 2: identity-residual path, small batch -> fused kernel, f32 MXU.
    x2 = jax.random.normal(kx, (batch, out_s), jnp.float32)
    params2 = init_params(kp, out_s, out_s)
    prep2 = prepare_params(params2, out_s, out_s, mxu_dtype=jnp.float32)
    out2 = jax.block_until_ready(residual_block_mlp(x2, prep2, out_s, out_s))
    ref2 = _reference(x2, params2, out_s, out_s)
    assert out2.shape == (batch, out_s)
    assert jnp.allclose(out2, ref2, atol=1e-4, rtol=1e-4), "case2 fused/id mismatch"

    # Case 3: projection path, batch-tiled grid with ragged last tile, bf16 MXU.
    in3, out3, n3 = 96, 192, 600
    x3 = jax.random.normal(kx, (n3, in3), jnp.float32)
    params3 = init_params(kp, in3, out3)
    prep3 = prepare_params(params3, in3, out3)             # bf16 weights (default)
    out3_ = jax.block_until_ready(
        residual_block_mlp(x3, prep3, in3, out3, tile_rows=256))
    ref3 = _reference(x3, params3, in3, out3)
    assert out3_.shape == (n3, out3)
    assert jnp.allclose(out3_, ref3, atol=6e-2, rtol=6e-2), "case3 tiled/proj mismatch"

    # Case 4: identity path, batch-tiled grid with ragged last tile, bf16 MXU.
    in4, n4 = 192, 520
    x4 = jax.random.normal(kx, (n4, in4), jnp.float32)
    params4 = init_params(kp, in4, in4)
    prep4 = prepare_params(params4, in4, in4)
    out4_ = jax.block_until_ready(
        residual_block_mlp(x4, prep4, in4, in4, tile_rows=256))
    ref4 = _reference(x4, params4, in4, in4)
    assert out4_.shape == (n4, in4)
    assert jnp.allclose(out4_, ref4, atol=6e-2, rtol=6e-2), "case4 tiled/id mismatch"

    print("KERNEL_OK")
</pallas_src>

<mosaic_0001>
module attributes {stable_mosaic.version = 11 : i64} {
  func.func @_fused_proj_kernel(%arg0: memref<8x32xf32, #tpu.memory_space<vmem>>, %arg1: memref<32x128xf32, #tpu.memory_space<vmem>>, %arg2: memref<32x128xf32, #tpu.memory_space<vmem>>, %arg3: memref<128x128xf32, #tpu.memory_space<vmem>>, %arg4: memref<1x128xf32, #tpu.memory_space<vmem>>, %arg5: memref<1x128xf32, #tpu.memory_space<vmem>>, %arg6: memref<1x128xf32, #tpu.memory_space<vmem>>, %arg7: memref<1x128xf32, #tpu.memory_space<vmem>>, %arg8: memref<1x128xf32, #tpu.memory_space<vmem>>, %arg9: memref<8x128xf32, #tpu.memory_space<vmem>>) attributes {dimension_semantics = [], scalar_prefetch = 0 : i64, scratch_operands = 0 : i64, tpu.core_type = #tpu.core_type<tc>} {
    %c0 = arith.constant 0 : index
    %c0_0 = arith.constant 0 : index
    %0 = vector.load %arg0[%c0, %c0_0] : memref<8x32xf32, #tpu.memory_space<vmem>>, vector<8x32xf32>
    %c0_1 = arith.constant 0 : index
    %c0_2 = arith.constant 0 : index
    %1 = vector.load %arg1[%c0_1, %c0_2] : memref<32x128xf32, #tpu.memory_space<vmem>>, vector<32x128xf32>
    %cst = arith.constant dense<0.000000e+00> : vector<8x128xf32>
    %2 = tpu.matmul %0, %1, %cst {dimension_numbers = #tpu.dot_dimension_numbers<[1], [0], [0], [1], [0, 0, 1, 1], [], []>} : vector<8x32xf32>, vector<32x128xf32>, vector<8x128xf32> -> vector<8x128xf32>
    %c0_3 = arith.constant 0 : index
    %c0_4 = arith.constant 0 : index
    %3 = vector.load %arg2[%c0_3, %c0_4] : memref<32x128xf32, #tpu.memory_space<vmem>>, vector<32x128xf32>
    %cst_5 = arith.constant dense<0.000000e+00> : vector<8x128xf32>
    %4 = tpu.matmul %0, %3, %cst_5 {dimension_numbers = #tpu.dot_dimension_numbers<[1], [0], [0], [1], [0, 0, 1, 1], [], []>} : vector<8x32xf32>, vector<32x128xf32>, vector<8x128xf32> -> vector<8x128xf32>
    %c0_6 = arith.constant 0 : index
    %c0_7 = arith.constant 0 : index
    %5 = vector.load %arg4[%c0_6, %c0_7] : memref<1x128xf32, #tpu.memory_space<vmem>>, vector<1x128xf32>
    %c0_8 = arith.constant 0 : index
    %c0_9 = arith.constant 0 : index
    %6 = vector.load %arg5[%c0_8, %c0_9] : memref<1x128xf32, #tpu.memory_space<vmem>>, vector<1x128xf32>
    %cst_10 = arith.constant dense<0.000000e+00> : vector<128xf32>
    %7 = vector.multi_reduction <add>, %2, %cst_10 [0] : vector<8x128xf32> to vector<128xf32>
    %8 = vector.shape_cast %7 : vector<128xf32> to vector<1x128xf32>
    %9 = arith.mulf %2, %2 : vector<8x128xf32>
    %cst_11 = arith.constant dense<0.000000e+00> : vector<128xf32>
    %10 = vector.multi_reduction <add>, %9, %cst_11 [0] : vector<8x128xf32> to vector<128xf32>
    %11 = vector.shape_cast %10 : vector<128xf32> to vector<1x128xf32>
    %cst_12 = arith.constant 1.250000e-01 : f32
    %12 = vector.broadcast %cst_12 : f32 to vector<1x128xf32>
    %13 = arith.mulf %8, %12 : vector<1x128xf32>
    %cst_13 = arith.constant 1.250000e-01 : f32
    %14 = vector.broadcast %cst_13 : f32 to vector<1x128xf32>
    %15 = arith.mulf %11, %14 : vector<1x128xf32>
    %16 = arith.mulf %13, %13 : vector<1x128xf32>
    %17 = arith.subf %15, %16 : vector<1x128xf32>
    %cst_14 = arith.constant 0.000000e+00 : f32
    %18 = vector.broadcast %cst_14 : f32 to vector<1x128xf32>
    %19 = arith.maximumf %17, %18 : vector<1x128xf32>
    %cst_15 = arith.constant 9.99999974E-6 : f32
    %20 = vector.broadcast %cst_15 : f32 to vector<1x128xf32>
    %21 = arith.addf %19, %20 : vector<1x128xf32>
    %22 = math.rsqrt %21 : vector<1x128xf32>
    %23 = arith.mulf %5, %22 : vector<1x128xf32>
    %24 = arith.mulf %13, %23 : vector<1x128xf32>
    %25 = arith.subf %6, %24 : vector<1x128xf32>
    %26 = vector.broadcast %23 : vector<1x128xf32> to vector<8x128xf32>
    %27 = arith.mulf %2, %26 : vector<8x128xf32>
    %28 = vector.broadcast %25 : vector<1x128xf32> to vector<8x128xf32>
    %29 = arith.addf %27, %28 : vector<8x128xf32>
    %cst_16 = arith.constant 0.000000e+00 : f32
    %30 = vector.broadcast %cst_16 : f32 to vector<8x128xf32>
    %31 = arith.maximumf %29, %30 : vector<8x128xf32>
    %c0_17 = arith.constant 0 : index
    %c0_18 = arith.constant 0 : index
    %32 = vector.load %arg3[%c0_17, %c0_18] : memref<128x128xf32, #tpu.memory_space<vmem>>, vector<128x128xf32>
    %cst_19 = arith.constant dense<0.000000e+00> : vector<8x128xf32>
    %33 = tpu.matmul %31, %32, %cst_19 {dimension_numbers = #tpu.dot_dimension_numbers<[1], [0], [0], [1], [0, 0, 1, 1], [], []>} : vector<8x128xf32>, vector<128x128xf32>, vector<8x128xf32> -> vector<8x128xf32>
    %c0_20 = arith.constant 0 : index
    %c0_21 = arith.constant 0 : index
    %34 = vector.load %arg6[%c0_20, %c0_21] : memref<1x128xf32, #tpu.memory_space<vmem>>, vector<1x128xf32>
    %c0_22 = arith.constant 0 : index
    %c0_23 = arith.constant 0 : index
    %35 = vector.load %arg7[%c0_22, %c0_23] : memref<1x128xf32, #tpu.memory_space<vmem>>, vector<1x128xf32>
    %cst_24 = arith.constant dense<0.000000e+00> : vector<128xf32>
    %36 = vector.multi_reduction <add>, %33, %cst_24 [0] : vector<8x128xf32> to vector<128xf32>
    %37 = vector.shape_cast %36 : vector<128xf32> to vector<1x128xf32>
    %38 = arith.mulf %33, %33 : vector<8x128xf32>
    %cst_25 = arith.constant dense<0.000000e+00> : vector<128xf32>
    %39 = vector.multi_reduction <add>, %38, %cst_25 [0] : vector<8x128xf32> to vector<128xf32>
    %40 = vector.shape_cast %39 : vector<128xf32> to vector<1x128xf32>
    %cst_26 = arith.constant 1.250000e-01 : f32
    %41 = vector.broadcast %cst_26 : f32 to vector<1x128xf32>
    %42 = arith.mulf %37, %41 : vector<1x128xf32>
    %cst_27 = arith.constant 1.250000e-01 : f32
    %43 = vector.broadcast %cst_27 : f32 to vector<1x128xf32>
    %44 = arith.mulf %40, %43 : vector<1x128xf32>
    %45 = arith.mulf %42, %42 : vector<1x128xf32>
    %46 = arith.subf %44, %45 : vector<1x128xf32>
    %cst_28 = arith.constant 0.000000e+00 : f32
    %47 = vector.broadcast %cst_28 : f32 to vector<1x128xf32>
    %48 = arith.maximumf %46, %47 : vector<1x128xf32>
    %cst_29 = arith.constant 9.99999974E-6 : f32
    %49 = vector.broadcast %cst_29 : f32 to vector<1x128xf32>
    %50 = arith.addf %48, %49 : vector<1x128xf32>
    %51 = math.rsqrt %50 : vector<1x128xf32>
    %52 = arith.mulf %34, %51 : vector<1x128xf32>
    %53 = arith.mulf %42, %52 : vector<1x128xf32>
    %54 = arith.subf %35, %53 : vector<1x128xf32>
    %55 = vector.broadcast %52 : vector<1x128xf32> to vector<8x128xf32>
    %56 = arith.mulf %33, %55 : vector<8x128xf32>
    %57 = arith.addf %4, %56 : vector<8x128xf32>
    %c0_30 = arith.constant 0 : index
    %c0_31 = arith.constant 0 : index
    %58 = vector.load %arg8[%c0_30, %c0_31] : memref<1x128xf32, #tpu.memory_space<vmem>>, vector<1x128xf32>
    %59 = arith.addf %54, %58 : vector<1x128xf32>
    %60 = vector.broadcast %59 : vector<1x128xf32> to vector<8x128xf32>
    %61 = arith.addf %57, %60 : vector<8x128xf32>
    %cst_32 = arith.constant 0.000000e+00 : f32
    %62 = vector.broadcast %cst_32 : f32 to vector<8x128xf32>
    %63 = arith.maximumf %61, %62 : vector<8x128xf32>
    %c0_33 = arith.constant 0 : index
    %c0_34 = arith.constant 0 : index
    %64 = vector.load %arg9[%c0_33, %c0_34] : memref<8x128xf32, #tpu.memory_space<vmem>>, vector<8x128xf32>
    tpu.vector_store %arg9[%c0_33, %c0_34], %63 {strides = array<i32>} : memref<8x128xf32, #tpu.memory_space<vmem>>, vector<8x128xf32>,
    return
  }
}

</mosaic_0001>

<bundles_post_ra>
// kernel: tpu_custom_call.1
= control target key start
LH: loop header
LB: loop body
LE: loop exit
PB: predicated region body
PF: predicated region fallthrough
CT: control target
= control target key end

     0   :  { %14 = vsyncpa [#allocation3], 0  ;;  %s766_s0 = inlined_call_operand.hbm [shape: f32[8,32], index: 0, kind: input, shape index: {}]   ;;  %s767_s1 = inlined_call_operand.hbm [shape: f32[32,128], index: 1, kind: input, shape index: {}]   ;;  %s768_s2 = inlined_call_operand.hbm [shape: f32[32,128], index: 2, kind: input, shape index: {}]   ;;  %s769_s3 = inlined_call_operand.hbm [shape: f32[128,128], index: 3, kind: input, shape index: {}]   ;;  %s770_s4 = inlined_call_operand.vmem [shape: f32[1,128], index: 4, kind: input, shape index: {}]   ;;  %s771_s5 = inlined_call_operand.vmem [shape: f32[1,128], index: 5, kind: input, shape index: {}]   ;;  %s772_s6 = inlined_call_operand.vmem [shape: f32[1,128], index: 6, kind: input, shape index: {}]   ;;  %s773_s7 = inlined_call_operand.vmem [shape: f32[1,128], index: 7, kind: input, shape index: {}]   ;;  %s774_s8 = inlined_call_operand.vmem [shape: f32[1,128], index: 8, kind: input, shape index: {}]   ;;  %s775_s9 = inlined_call_operand.hbm [shape: f32[8,128], index: 9, kind: output, shape index: {}]  }
   0x1   :  { %15 = vsyncpa [#allocation6], 0 }
   0x2   :  { %16 = vsyncpa [#allocation9], 0 }
   0x3   :  { %17 = vsyncpa [#allocation4], 0  ;;  %s632_s30 = smov [#allocation5]  }
   0x4   :  { %s33_s10 = sshll.u32 %s632_s30, 4  ;;  %s34_s10 = int_to_ptr.vmem [resolvable:$true] %s33_s10 }
   0x5   :  { %s532_s11 = scalar_lea.vmem %s34_s10, 512  ;;  %p537_p1 = scmp.lt.s32.totalorder %s34_s10, %s34_s10 }
   0x6   :  { %p533_p0 = scmp.ne.s32.totalorder %s34_s10, %s532_s11  ;;  %p538_p2 = scmp.lt.s32.totalorder %s532_s11, %s532_s11 }
   0x8   :  { %p539_p3 = por %p538_p2, %p537_p1 }
   0xa   :  { %p540_p4 = pnand %p539_p3, %p533_p0 }
   0xc   :  { %543 = shalt.err (!%p540_p4)
}
   0xd   :  { %s633_s12 = smov 128   ;;  %s634_s13 = smov 8  }
   0xe   :  { %39 = dma.hbm_to_vmem [thread:$0]  %s767_s1, 512, %s34_s10, [#allocation6], %s633_s12, %s633_s12, %s634_s13  }
   0xf   :  { %s635_s16 = smov [#allocation2]   ;;  %s636_s18 = smov [#allocation7]  }
  0x10   :  { %s24_s17 = sshll.u32 %s635_s16, 4  ;;  %s45_s19 = sshll.u32 %s636_s18, 4  ;;  %s25_s17 = int_to_ptr.vmem [resolvable:$true] %s24_s17  ;;  %s46_s19 = int_to_ptr.vmem [resolvable:$true] %s45_s19 }
  0x11   :  { %s552_s20 = scalar_lea.vmem %s25_s17, 128  ;;  %p557_p6 = scmp.lt.s32.totalorder %s25_s17, %s25_s17 }
  0x12   :  { %p553_p5 = scmp.ne.s32.totalorder %s25_s17, %s552_s20  ;;  %p558_p7 = scmp.lt.s32.totalorder %s552_s20, %s552_s20 }
  0x14   :  { %p559_p8 = por %p558_p7, %p557_p6 }
  0x16   :  { %p560_p9 = pnand %p559_p8, %p553_p5 }
  0x18   :  { %563 = shalt.err (!%p560_p9)
}
  0x19   :  { %27 = dma.hbm_to_vmem [thread:$0]  %s766_s0, 128, %s25_s17, [#allocation3]  }
  0x1a   :  { %s572_s23 = scalar_lea.vmem %s46_s19, 512  ;;  %p577_p11 = scmp.lt.s32.totalorder %s46_s19, %s46_s19 }
  0x1b   :  { %p573_p10 = scmp.ne.s32.totalorder %s46_s19, %s572_s23  ;;  %p578_p12 = scmp.lt.s32.totalorder %s572_s23, %s572_s23 }
  0x1d   :  { %p579_p13 = por %p578_p12, %p577_p11 }
  0x1f   :  { %p580_p0 = pnand %p579_p13, %p573_p10 }
  0x21   :  { %583 = shalt.err (!%p580_p0)
}
  0x22   :  { %51 = dma.hbm_to_vmem [thread:$0]  %s768_s2, 512, %s46_s19, [#allocation6], %s633_s12, %s633_s12, %s634_s13  }
  0x23   :  { %s637_s25 = smov [#allocation8]  }
  0x24   :  { %s57_s26 = sshll.u32 %s637_s25, 4  ;;  %s58_s26 = int_to_ptr.vmem [resolvable:$true] %s57_s26 }
  0x25   :  { %s592_s27 = scalar_lea.vmem %s58_s26, 2048  ;;  %p597_p2 = scmp.lt.s32.totalorder %s58_s26, %s58_s26 }
  0x26   :  { %p593_p1 = scmp.ne.s32.totalorder %s58_s26, %s592_s27  ;;  %p598_p3 = scmp.lt.s32.totalorder %s592_s27, %s592_s27 }
  0x28   :  { %p599_p4 = por %p598_p3, %p597_p2 }
  0x2a   :  { %p600_p5 = pnand %p599_p4, %p593_p1 }
  0x2c   :  { %603 = shalt.err (!%p600_p5)
}
  0x2d   :  { %63 = dma.hbm_to_vmem [thread:$0]  %s769_s3, 2048, %s58_s26, [#allocation9], %s633_s12, %s633_s12, %s634_s13  }
  0x2e   :  { %624 = dma.done.wait [#allocation3], 128  }
  0x2f   :  { %625 = vsyncadd [#allocation3], 4294967168 }
  0x30   :  { %626 = dma.done.wait [#allocation6], 1024  }
  0x31   :  { %627 = vsyncadd [#allocation6], 4294966272 }
  0x32   :  { %628 = dma.done.wait [#allocation9], 2048  }
  0x33   :  { %629 = vsyncadd [#allocation9], 4294965248  ;;  %v638_v0 = vmov 0.0   ;;  %vm639_vm0 = vmmov 0   ;;  %v90_v1 = vld [vmem:[#allocation5 + $0x18] sm:$0xff]  ;;  %v89_v2 = vld [vmem:[#allocation5 + $0x10] sm:$0xff]  ;;  %v195_v47 = vlaneseq }
  0x34   :  { %454 = vmatprep.subr.mxu0 %v638_v0  ;;  %462 = vmatprep.mubr.msk.f32.mxu0 %vm639_vm0, %v638_v0  ;;  %v88_v3 = vld [vmem:[#allocation5 + $0x8] sm:$0xff]  ;;  %v87_v4 = vld [vmem:[#allocation5] sm:$0xff]  ;;  %v720_v5 = vld [vmem:[#allocation2] sm:$0xff]  ;;  %vm91_vm1 = vcmask 261120   ;;  %s640_s14 = smov [#allocation10]  }
  0x35   :  { %465 = vmatprep.subr.mxu1 %v638_v0  ;;  %497 = vmatprep.mubr.msk.f32.mxu1 %vm639_vm0, %v638_v0  ;;  %v224_v6 = vld [vmem:[#allocation8 + $0x78] sm:$0xff]  ;;  %v223_v7 = vld [vmem:[#allocation8 + $0x70] sm:$0xff]  ;;  %v222_v8 = vld [vmem:[#allocation8 + $0x68] sm:$0xff]  ;;  %v196_v48 = vshrl.u32 %v195_v47, 7  ;;  %s414_s15 = sshll.u32 %s640_s14, 4  ;;  %s415_s15 = int_to_ptr.vmem [resolvable:$true] %s414_s15 }
  0x36   :  { %455 = vmatpush3.msra.mxu0 %v90_v1  ;;  %466 = vmatpush3.msra.mxu1 %v224_v6  ;;  %v221_v9 = vld [vmem:[#allocation8 + $0x60] sm:$0xff]  ;;  %v220_v10 = vld [vmem:[#allocation8 + $0x58] sm:$0xff]  ;;  %v219_v11 = vld [vmem:[#allocation8 + $0x50] sm:$0xff]  ;;  %p609_p7 = scmp.lt.s32.totalorder %s415_s15, %s415_s15 }
  0x37   :  { %456 = vmatprep.subr.mxu0 %v638_v0  ;;  %467 = vmatprep.subr.mxu1 %v638_v0  ;;  %v218_v12 = vld [vmem:[#allocation8 + $0x48] sm:$0xff]  ;;  %v217_v13 = vld [vmem:[#allocation8 + $0x40] sm:$0xff]  ;;  %v216_v14 = vld [vmem:[#allocation8 + $0x38] sm:$0xff]  ;;  %v197_v50 = vsub.s32 0, %v196_v48 }
  0x38   :  { %457 = vmatpush3.msra.mxu0 %v89_v2  ;;  %468 = vmatpush3.msra.mxu1 %v223_v7  ;;  %v215_v15 = vld [vmem:[#allocation8 + $0x30] sm:$0xff]  ;;  %v214_v16 = vld [vmem:[#allocation8 + $0x28] sm:$0xff]  ;;  %v213_v17 = vld [vmem:[#allocation8 + $0x20] sm:$0xff] }
  0x39   :  { %458 = vmatprep.subr.mxu0 %v638_v0  ;;  %469 = vmatprep.subr.mxu1 %v638_v0  ;;  %v212_v18 = vld [vmem:[#allocation8 + $0x18] sm:$0xff]  ;;  %v211_v19 = vld [vmem:[#allocation8 + $0x10] sm:$0xff]  ;;  %v210_v20 = vld [vmem:[#allocation8 + $0x8] sm:$0xff] }
  0x3a   :  { %459 = vmatpush3.msra.mxu0 %v88_v3  ;;  %470 = vmatpush3.msra.mxu1 %v222_v8  ;;  %v209_v21 = vld [vmem:[#allocation8] sm:$0xff]  ;;  %v168_v22 = vld [vmem:[#allocation7 + $0x18] sm:$0xff]  ;;  %v167_v23 = vld [vmem:[#allocation7 + $0x10] sm:$0xff] }
  0x3b   :  { %460 = vmatprep.subr.mxu0 %v638_v0  ;;  %471 = vmatprep.subr.mxu1 %v638_v0  ;;  %v166_v24 = vld [vmem:[#allocation7 + $0x8] sm:$0xff]  ;;  %v165_v25 = vld [vmem:[#allocation7] sm:$0xff]  ;;  %v169_v49 = vld [vmem:[%s770_s4] sm:$0x1] }
  0x3c   :  { %461 = vmatpush3.msra.mxu0 %v87_v4  ;;  %472 = vmatpush3.msra.mxu1 %v221_v9  ;;  %v170_v53 = vld [vmem:[%s771_s5] sm:$0x1] }
  0x3d   :  { %463 = vmatmul.mubr.msk.f32.vlgmr.msra.gmra.mxu0 %vm91_vm1, %v720_v5  ;;  %500 = vmatprep.subr.mxu0 %v638_v0 }
  0x3e   :  { %508 = vmatprep.mubr.msk.f32.mxu0 %vm639_vm0, %v638_v0  ;;  %473 = vmatprep.subr.mxu1 %v638_v0 }
  0x3f   :  { %474 = vmatpush3.msra.mxu1 %v220_v10  ;;  %501 = vmatpush3.msra.mxu0 %v168_v22 }
  0x40   :  { %475 = vmatprep.subr.mxu1 %v638_v0  ;;  %502 = vmatprep.subr.mxu0 %v638_v0 }
  0x41   :  { %476 = vmatpush3.msra.mxu1 %v219_v11  ;;  %503 = vmatpush3.msra.mxu0 %v167_v23  ;;  %v296_v23 = vld [vmem:[%s773_s7] sm:$0x1] }
  0x42   :  { %477 = vmatprep.subr.mxu1 %v638_v0  ;;  %504 = vmatprep.subr.mxu0 %v638_v0 }
  0x43   :  { %478 = vmatpush3.msra.mxu1 %v218_v12  ;;  %505 = vmatpush3.msra.mxu0 %v166_v24 }
  0x44   :  { %479 = vmatprep.subr.mxu1 %v638_v0  ;;  %506 = vmatprep.subr.mxu0 %v638_v0 }
  0x45   :  { %480 = vmatpush3.msra.mxu1 %v217_v13  ;;  %507 = vmatpush3.msra.mxu0 %v165_v25 }
  0x46   :  { %481 = vmatprep.subr.mxu1 %v638_v0  ;;  %509 = vmatmul.mubr.msk.f32.vlgmr.msra.gmra.mxu0 %vm91_vm1, %v720_v5 }
  0x47   :  { %482 = vmatpush3.msra.mxu1 %v216_v14 }
  0x48   :  { %483 = vmatprep.subr.mxu1 %v638_v0 }
  0x49   :  { %484 = vmatpush3.msra.mxu1 %v215_v15 }
  0x4a   :  { %485 = vmatprep.subr.mxu1 %v638_v0 }
  0x4b   :  { %486 = vmatpush3.msra.mxu1 %v214_v16 }
  0x4c   :  { %487 = vmatprep.subr.mxu1 %v638_v0 }
  0x4d   :  { %488 = vmatpush3.msra.mxu1 %v213_v17 }
  0x4e   :  { %489 = vmatprep.subr.mxu1 %v638_v0 }
  0x4f   :  { %490 = vmatpush3.msra.mxu1 %v212_v18 }
  0x50   :  { %491 = vmatprep.subr.mxu1 %v638_v0 }
  0x51   :  { %492 = vmatpush3.msra.mxu1 %v211_v19 }
  0x52   :  { %493 = vmatprep.subr.mxu1 %v638_v0 }
  0x53   :  { %494 = vmatpush3.msra.mxu1 %v210_v20  ;;  %v295_v20 = vld [vmem:[%s772_s6] sm:$0x1]  ;;  %s604_s6 = scalar_lea.vmem %s415_s15, 128 }
  0x54   :  { %495 = vmatprep.subr.mxu1 %v638_v0  ;;  %p605_p6 = scmp.ne.s32.totalorder %s415_s15, %s604_s6  ;;  %p610_p8 = scmp.lt.s32.totalorder %s604_s6, %s604_s6 }
  0x55   :  { %496 = vmatpush3.msra.mxu1 %v209_v21 }
  0x56   :  { %p611_p9 = por %p610_p8, %p609_p7 }
  0x58   :  { %p612_p10 = pnand %p611_p9, %p605_p6 }
  0xfd   :  { %v161_v26 = vpop.f32.mrf.mxu0 }
  0xfe   :  { %v171_v27 = vrot.slane %v161_v26, 4  ;;  %v177_v28 = vmul.f32 %v161_v26, %v161_v26 }
  0xff   :  { %v464_v29 = vpop.f32.mrf.mxu0 }
 0x100   :  { %v172_v30 = vadd.f32 %v171_v27, %v161_v26  ;;  %v178_v31 = vrot.slane %v177_v28, 4 }
 0x102   :  { %v173_v32 = vrot.slane %v172_v30, 2  ;;  %v179_v33 = vadd.f32 %v178_v31, %v177_v28 }
 0x104   :  { %v174_v34 = vadd.f32 %v173_v32, %v172_v30  ;;  %v180_v35 = vrot.slane %v179_v33, 2 }
 0x106   :  { %v175_v36 = vrot.slane %v174_v34, 1  ;;  %v181_v37 = vadd.f32 %v180_v35, %v179_v33  ;;  %v393_v61 = vpop.f32.mrf.mxu0 }
 0x108   :  { %v176_v38 = vadd.f32 %v175_v36, %v174_v34  ;;  %v182_v39 = vrot.slane %v181_v37, 1  ;;  %v510_v62 = vpop.f32.mrf.mxu0 }
 0x10a   :  { %v183_v40 = vadd.f32 %v182_v39, %v181_v37  ;;  %v184_v41 = vmul.f32 0.125, %v176_v38 }
 0x10c   :  { %v185_v42 = vmul.f32 0.125, %v183_v40  ;;  %v186_v43 = vmul.f32 %v184_v41, %v184_v41 }
 0x10e   :  { %v187_v44 = vsub.f32 %v185_v42, %v186_v43 }
 0x110   :  { %v188_v45 = vmax.f32 %v187_v44, 0.0 }
 0x112   :  { %v189_v46 = vadd.f32 1e-05, %v188_v45 }
 0x114   :  { %520 = vrsqrt.f32 %v189_v46 }
 0x121   :  { %v521_v51 = vpop.eup %520 }
 0x122   :  { %v191_v52 = vmul.f32 %v521_v51, %v169_v49 }
 0x124   :  { %v198_v54 = vrot.slane %v191_v52, %v197_v50  ;;  %v192_v55 = vmul.f32 %v191_v52, %v184_v41 }
 0x126   :  { %v193_v56 = vsub.f32 %v170_v53, %v192_v55  ;;  %v200_v57 = vmul.f32 %v198_v54, %v161_v26  ;;  %v397_v26 = vld [vmem:[%s774_s8] sm:$0x1] }
 0x128   :  { %v205_v58 = vrot.slane %v193_v56, %v197_v50 }
 0x12a   :  { %v207_v59 = vadd.f32 %v205_v58, %v200_v57 }
 0x12c   :  { %v208_v60 = vmax.f32 %v207_v59, 0.0 }
 0x12e   :  { %498 = vmatmul.mubr.f32.vlgmr.msra.gmra.mxu1 %v208_v60 }
 0x1ee   :  { %v291_v63 = vpop.f32.mrf.mxu1 }
 0x1ef   :  { %v297_v0 = vrot.slane %v291_v63, 4  ;;  %v303_v1 = vmul.f32 %v291_v63, %v291_v63 }
 0x1f0   :  { %v499_v2 = vpop.f32.mrf.mxu1 }
 0x1f1   :  { %v298_v3 = vadd.f32 %v297_v0, %v291_v63  ;;  %v304_v4 = vrot.slane %v303_v1, 4 }
 0x1f3   :  { %v299_v5 = vrot.slane %v298_v3, 2  ;;  %v305_v6 = vadd.f32 %v304_v4, %v303_v1 }
 0x1f5   :  { %v300_v7 = vadd.f32 %v299_v5, %v298_v3  ;;  %v306_v8 = vrot.slane %v305_v6, 2 }
 0x1f7   :  { %v301_v9 = vrot.slane %v300_v7, 1  ;;  %v307_v10 = vadd.f32 %v306_v8, %v305_v6 }
 0x1f9   :  { %v302_v11 = vadd.f32 %v301_v9, %v300_v7  ;;  %v308_v12 = vrot.slane %v307_v10, 1 }
 0x1fb   :  { %v309_v13 = vadd.f32 %v308_v12, %v307_v10  ;;  %v310_v14 = vmul.f32 0.125, %v302_v11 }
 0x1fd   :  { %v311_v15 = vmul.f32 0.125, %v309_v13  ;;  %v312_v16 = vmul.f32 %v310_v14, %v310_v14 }
 0x1ff   :  { %v313_v17 = vsub.f32 %v311_v15, %v312_v16 }
 0x201   :  { %v314_v18 = vmax.f32 %v313_v17, 0.0 }
 0x203   :  { %v315_v19 = vadd.f32 1e-05, %v314_v18 }
 0x205   :  { %522 = vrsqrt.f32 %v315_v19 }
 0x212   :  { %v523_v21 = vpop.eup %522 }
 0x213   :  { %v317_v22 = vmul.f32 %v523_v21, %v295_v20 }
 0x215   :  { %v318_v24 = vmul.f32 %v317_v22, %v310_v14  ;;  %v324_v25 = vrot.slane %v317_v22, %v197_v50 }
 0x217   :  { %v319_v27 = vsub.f32 %v296_v23, %v318_v24  ;;  %v326_v28 = vmul.f32 %v324_v25, %v291_v63 }
 0x219   :  { %v398_v29 = vadd.f32 %v397_v26, %v319_v27  ;;  %v394_v30 = vadd.f32 %v393_v61, %v326_v28 }
 0x21b   :  { %v403_v31 = vrot.slane %v398_v29, %v197_v50 }
 0x21d   :  { %v405_v32 = vadd.f32 %v403_v31, %v394_v30 }
 0x21f   :  { %v406_v33 = vmax.f32 %v405_v32, 0.0 }
 0x221   :  { %407 = vst [vmem:[#allocation10] sm:$0xff] %v406_v33 }
 0x222   :  { %615 = shalt.err (!%p612_p10)
}
 0x223   :  { %417 = dma.vmem_to_hbm [thread:$0]  %s415_s15, 128, %s775_s9, [#allocation4]  }
 0x224   :  { %630 = dma.done.wait [#allocation4], 128  }
 0x225   :  { %631 = vsyncadd [#allocation4], 4294967168 }
 0x226   :  { %421 = vsyncpa [#allocation3], 1 }
 0x227   :  { %422 = vsyncpa [#allocation6], 1 }
 0x228   :  { %423 = vsyncpa [#allocation9], 1 }
 0x229   :  { %424 = vsyncpa [#allocation4], 1 }

</bundles_post_ra>
